<compile_context>
chip_gen: v7x
topology: tpu7x:2x2x1
jax: 0.10.0
libtpu: 0.0.40
codegen_flags: <defaults>
</compile_context>

<pallas_src>
import math

import jax
import jax.numpy as jnp
from jax.experimental import pallas as pl
from jax.experimental.pallas import tpu as pltpu


# ----------------------------- Pallas kernel ------------------------------ #
def _mlp_adapter_kernel(x_ref, w1_ref, b1_ref, w2_ref, b2_ref, o_ref):
    """Fused MLP tile: o = gelu_new(x @ w1 + b1) @ w2 + b2.  All VMEM-resident."""
    x = x_ref[...]                                            # [TB, D_in]  f32

    # linear1 (MXU, f32 accumulate) + f32 bias add (VPU)
    h = jnp.dot(x, w1_ref[...], preferred_element_type=jnp.float32) + b1_ref[...]

    # gelu_new (tanh-approximate GELU), f32: VPU muls + EUP tanh.
    c = math.sqrt(2.0 / math.pi)
    h2 = h * h
    h = 0.5 * h * (1.0 + jnp.tanh((c * h) * (1.0 + 0.044715 * h2)))

    # linear2 (MXU, f32 accumulate) + bias; stores only the true 180 columns.
    o_ref[...] = (
        jnp.dot(h, w2_ref[...], preferred_element_type=jnp.float32) + b2_ref[...]
    )


# ------------------------------- Wrapper ----------------------------------- #
def _round_up(n, m):
    return ((n + m - 1) // m) * m


def _pick_row_tile(batch, cap=1024):
    """Row-tile size: whole batch if small, else the largest power-of-two
    divisor <= cap.  1024 f32 rows keeps double-buffered in+out tiles well
    inside the smallest scoped-VMEM default (v5e 16 MiB / v7x 32 MiB)."""
    if batch <= cap:
        return batch
    for tb in (1024, 512, 256, 128, 64, 32, 16, 8):
        if batch % tb == 0:
            return tb
    # TODO(synk): ragged batch > cap with no pow2 divisor falls back to one block.
    return batch


@jax.jit
def mlp_task2adapter_forward(x, w1_io, b1, w2_io, b2):
    """x: [B, D_in] f32.  Pre-packed params (see pack_params): w1_io [D_in, Hp],
    b1 [1, Hp], w2_io [Hp, D_out], b2 [1, D_out], all f32.
    Returns the flat 1-D output of length B*D_out (torch .view(-1))."""
    B, d_in = x.shape
    h_pad = w1_io.shape[1]
    out_dim = w2_io.shape[1]

    tb = _pick_row_tile(B)
    grid = (pl.cdiv(B, tb),)

    flops = 2 * B * (d_in * h_pad + h_pad * out_dim)
    bytes_accessed = 4 * (
        x.size + w1_io.size + b1.size + w2_io.size + b2.size + B * out_dim
    )

    out = pl.pallas_call(
        _mlp_adapter_kernel,
        out_shape=jax.ShapeDtypeStruct((B, out_dim), jnp.float32),
        grid=grid,
        in_specs=[
            pl.BlockSpec((tb, d_in), lambda i: (i, 0)),        # rows tiled
            pl.BlockSpec((d_in, h_pad), lambda i: (0, 0)),     # VMEM-resident
            pl.BlockSpec((1, h_pad), lambda i: (0, 0)),
            pl.BlockSpec((h_pad, out_dim), lambda i: (0, 0)),
            pl.BlockSpec((1, out_dim), lambda i: (0, 0)),
        ],
        out_specs=pl.BlockSpec((tb, out_dim), lambda i: (i, 0)),
        compiler_params=pltpu.CompilerParams(
            dimension_semantics=("parallel",)),                # v7x: 2 TCs split rows
        cost_estimate=pl.CostEstimate(
            flops=flops,
            transcendentals=B * h_pad,
            bytes_accessed=bytes_accessed),
    )(x, w1_io, b1, w2_io, b2)

    # Contiguous (B, out_dim) -> (B*out_dim,): metadata-only reshape, no copy.
    return out.reshape(-1)


# --------------------------- Parameter init -------------------------------- #
def _xavier_uniform(key, out_features, in_features, gain):
    # Matches torch.nn.init.xavier_uniform_ on a [out, in] weight.
    bound = gain * math.sqrt(6.0 / (in_features + out_features))
    return jax.random.uniform(
        key, (out_features, in_features), jnp.float32, minval=-bound, maxval=bound
    )


def make_params(key, input_dim, hidden_dim, output_dim):
    """PyTorch-layout ([out, in]) f32 params, matching the module's init."""
    k1, k2 = jax.random.split(key)
    gain = 1e-07
    w1 = _xavier_uniform(k1, hidden_dim, input_dim, gain)
    b1 = jnp.zeros((hidden_dim,), jnp.float32)
    w2 = _xavier_uniform(k2, output_dim, hidden_dim, gain)
    b2 = jnp.zeros((output_dim,), jnp.float32)
    return w1, b1, w2, b2


def pack_params(w1, b1, w2, b2):
    """One-time packing into kernel layout (outside the per-call path):
    transpose to [in, out]; zero-pad the hidden axis (64 -> 128) for a
    lane-dense intermediate.  Padding is exact: padded hidden cols see zero
    weight+bias, gelu_new(0) == 0, and the matching w2 rows are zero.  The
    output axis keeps its true width (180) so the kernel writes no dead
    padding and the wrapper's reshape(-1) is free."""
    hidden_dim, input_dim = w1.shape
    output_dim = w2.shape[0]
    h_pad = _round_up(hidden_dim, 128)

    w1_io = jnp.zeros((input_dim, h_pad), jnp.float32).at[:, :hidden_dim].set(w1.T)
    b1_p = jnp.zeros((1, h_pad), jnp.float32).at[:, :hidden_dim].set(b1)
    w2_io = jnp.zeros((h_pad, output_dim), jnp.float32).at[:hidden_dim, :].set(w2.T)
    b2_p = b2.reshape(1, output_dim).astype(jnp.float32)
    return w1_io, b1_p, w2_io, b2_p


# ------------------------------- Reference --------------------------------- #
def _gelu_new(h):
    c = math.sqrt(2.0 / math.pi)
    return 0.5 * h * (1.0 + jnp.tanh(c * (h + 0.044715 * h ** 3)))


def _reference_f32(x, w1, b1, w2, b2):
    h = _gelu_new(x @ w1.T + b1)
    return (h @ w2.T + b2).reshape(-1)


if __name__ == "__main__":
    # Synthetic config
    task_emb_dim = 32
    generator_hdim = 64
    d_model = 16
    adapter_dim = 4
    adapt_layer_norm = True
    output_dim = d_model * adapter_dim * 2 + d_model + adapter_dim
    if adapt_layer_norm:
        output_dim += 2 * d_model          # -> 180

    batch = 2

    key = jax.random.PRNGKey(0)
    kx, kp = jax.random.split(key)
    x = jax.random.normal(kx, (batch, task_emb_dim), jnp.float32)
    w1, b1, w2, b2 = make_params(kp, task_emb_dim, generator_hdim, output_dim)

    # One-time packing into kernel layout (outside the per-call path).
    w1_io, b1_p, w2_io, b2_p = pack_params(w1, b1, w2, b2)

    out = mlp_task2adapter_forward(x, w1_io, b1_p, w2_io, b2_p)
    out = jax.block_until_ready(out)
    assert out.shape == (batch * output_dim,), out.shape

    # f32 module-semantics reference (both sides are f32; tolerance only covers
    # MXU pass/accumulation-order differences at ~1e-15 value magnitudes).
    ref = _reference_f32(x, w1, b1, w2, b2)
    scale = jnp.max(jnp.abs(ref)) + 1e-30
    assert jnp.allclose(out, ref, rtol=1e-2, atol=1e-3 * scale), \
        "mismatch vs f32 reference"

    print("KERNEL_OK")
</pallas_src>

<mosaic_0001>
module attributes {stable_mosaic.version = 11 : i64} {
  func.func @_mlp_adapter_kernel(%arg0: i32, %arg1: memref<2x32xf32, #tpu.memory_space<vmem>>, %arg2: memref<32x128xf32, #tpu.memory_space<vmem>>, %arg3: memref<1x128xf32, #tpu.memory_space<vmem>>, %arg4: memref<128x180xf32, #tpu.memory_space<vmem>>, %arg5: memref<1x180xf32, #tpu.memory_space<vmem>>, %arg6: memref<2x180xf32, #tpu.memory_space<vmem>>) attributes {dimension_semantics = [#tpu.dimension_semantics<parallel>], iteration_bounds = array<i64: 1>, scalar_prefetch = 0 : i64, scratch_operands = 0 : i64, tpu.core_type = #tpu.core_type<tc>, window_params = [{transform_indices = @transform_0, window_bounds = array<i64: 2, 32>}, {pipeline_mode = #tpu.pipeline_mode<synchronous>, transform_indices = @transform_1, window_bounds = array<i64: 32, 128>}, {pipeline_mode = #tpu.pipeline_mode<synchronous>, transform_indices = @transform_2, window_bounds = array<i64: 1, 128>}, {pipeline_mode = #tpu.pipeline_mode<synchronous>, transform_indices = @transform_3, window_bounds = array<i64: 128, 180>}, {pipeline_mode = #tpu.pipeline_mode<synchronous>, transform_indices = @transform_4, window_bounds = array<i64: 1, 180>}, {transform_indices = @transform_5, window_bounds = array<i64: 2, 180>}]} {
    %c0 = arith.constant 0 : index
    %c0_0 = arith.constant 0 : index
    %0 = vector.load %arg1[%c0, %c0_0] : memref<2x32xf32, #tpu.memory_space<vmem>>, vector<2x32xf32>
    %c0_1 = arith.constant 0 : index
    %c0_2 = arith.constant 0 : index
    %1 = vector.load %arg2[%c0_1, %c0_2] : memref<32x128xf32, #tpu.memory_space<vmem>>, vector<32x128xf32>
    %cst = arith.constant dense<0.000000e+00> : vector<2x128xf32>
    %2 = tpu.matmul %0, %1, %cst {dimension_numbers = #tpu.dot_dimension_numbers<[1], [0], [0], [1], [0, 0, 1, 1], [], []>} : vector<2x32xf32>, vector<32x128xf32>, vector<2x128xf32> -> vector<2x128xf32>
    %c0_3 = arith.constant 0 : index
    %c0_4 = arith.constant 0 : index
    %3 = vector.load %arg3[%c0_3, %c0_4] : memref<1x128xf32, #tpu.memory_space<vmem>>, vector<1x128xf32>
    %4 = vector.broadcast %3 : vector<1x128xf32> to vector<2x128xf32>
    %5 = arith.addf %2, %4 : vector<2x128xf32>
    %6 = arith.mulf %5, %5 : vector<2x128xf32>
    %cst_5 = arith.constant 5.000000e-01 : f32
    %7 = vector.broadcast %cst_5 : f32 to vector<2x128xf32>
    %8 = arith.mulf %7, %5 : vector<2x128xf32>
    %cst_6 = arith.constant 0.797884583 : f32
    %9 = vector.broadcast %cst_6 : f32 to vector<2x128xf32>
    %10 = arith.mulf %9, %5 : vector<2x128xf32>
    %cst_7 = arith.constant 4.471500e-02 : f32
    %11 = vector.broadcast %cst_7 : f32 to vector<2x128xf32>
    %12 = arith.mulf %11, %6 : vector<2x128xf32>
    %cst_8 = arith.constant 1.000000e+00 : f32
    %13 = vector.broadcast %cst_8 : f32 to vector<2x128xf32>
    %14 = arith.addf %13, %12 : vector<2x128xf32>
    %15 = arith.mulf %10, %14 : vector<2x128xf32>
    %16 = math.tanh %15 : vector<2x128xf32>
    %cst_9 = arith.constant 1.000000e+00 : f32
    %17 = vector.broadcast %cst_9 : f32 to vector<2x128xf32>
    %18 = arith.addf %17, %16 : vector<2x128xf32>
    %19 = arith.mulf %8, %18 : vector<2x128xf32>
    %c0_10 = arith.constant 0 : index
    %c0_11 = arith.constant 0 : index
    %20 = vector.load %arg4[%c0_10, %c0_11] : memref<128x180xf32, #tpu.memory_space<vmem>>, vector<128x180xf32>
    %cst_12 = arith.constant dense<0.000000e+00> : vector<2x180xf32>
    %21 = tpu.matmul %19, %20, %cst_12 {dimension_numbers = #tpu.dot_dimension_numbers<[1], [0], [0], [1], [0, 0, 1, 1], [], []>} : vector<2x128xf32>, vector<128x180xf32>, vector<2x180xf32> -> vector<2x180xf32>
    %c0_13 = arith.constant 0 : index
    %c0_14 = arith.constant 0 : index
    %22 = vector.load %arg5[%c0_13, %c0_14] : memref<1x180xf32, #tpu.memory_space<vmem>>, vector<1x180xf32>
    %23 = vector.broadcast %22 : vector<1x180xf32> to vector<2x180xf32>
    %24 = arith.addf %21, %23 : vector<2x180xf32>
    %c0_15 = arith.constant 0 : index
    %c0_16 = arith.constant 0 : index
    %25 = vector.load %arg6[%c0_15, %c0_16] : memref<2x180xf32, #tpu.memory_space<vmem>>, vector<2x180xf32>
    tpu.vector_store %arg6[%c0_15, %c0_16], %24 {strides = array<i32>} : memref<2x180xf32, #tpu.memory_space<vmem>>, vector<2x180xf32>,
    return
  }
  func.func @transform_0(%arg0: i32) -> (i32, i32) {
    %c0_i32 = arith.constant 0 : i32
    %c0_i32_0 = arith.constant 0 : i32
    return %arg0, %c0_i32 : i32, i32
  }
  func.func @transform_1(%arg0: i32) -> (i32, i32) {
    %c0_i32 = arith.constant 0 : i32
    %c0_i32_0 = arith.constant 0 : i32
    %c0_i32_1 = arith.constant 0 : i32
    return %c0_i32, %c0_i32_0 : i32, i32
  }
  func.func @transform_2(%arg0: i32) -> (i32, i32) {
    %c0_i32 = arith.constant 0 : i32
    %c0_i32_0 = arith.constant 0 : i32
    %c0_i32_1 = arith.constant 0 : i32
    return %c0_i32, %c0_i32_0 : i32, i32
  }
  func.func @transform_3(%arg0: i32) -> (i32, i32) {
    %c0_i32 = arith.constant 0 : i32
    %c0_i32_0 = arith.constant 0 : i32
    %c0_i32_1 = arith.constant 0 : i32
    return %c0_i32, %c0_i32_0 : i32, i32
  }
  func.func @transform_4(%arg0: i32) -> (i32, i32) {
    %c0_i32 = arith.constant 0 : i32
    %c0_i32_0 = arith.constant 0 : i32
    %c0_i32_1 = arith.constant 0 : i32
    return %c0_i32, %c0_i32_0 : i32, i32
  }
  func.func @transform_5(%arg0: i32) -> (i32, i32) {
    %c0_i32 = arith.constant 0 : i32
    %c0_i32_0 = arith.constant 0 : i32
    return %arg0, %c0_i32 : i32, i32
  }
}

</mosaic_0001>

<bundles_post_ra>
// kernel: mlp_task2adapter_forward.1
= control target key start
LH: loop header
LB: loop body
LE: loop exit
PB: predicated region body
PF: predicated region fallthrough
CT: control target
= control target key end

     0   :  { %v311_v0 = vmov 0.0|0.0   ;;  %vm312_vm0 = vmmov 0   ;;  %v313_v4 = vmov 0.0   ;;  %vm32_vm1 = vcmask 261120   ;;  %s465_s1 = inlined_call_operand.vmem [shape: f32[32,128], index: 1, kind: input, shape index: {}]   ;;  %s466_s3 = inlined_call_operand.vmem [shape: f32[128,180], index: 3, kind: input, shape index: {}]   ;;  %s467_s0 = inlined_call_operand.vmem [shape: f32[2,32], index: 0, kind: input, shape index: {}]   ;;  %s468_s2 = inlined_call_operand.vmem [shape: f32[1,128], index: 2, kind: input, shape index: {}]   ;;  %s469_s4 = inlined_call_operand.vmem [shape: f32[1,180], index: 4, kind: input, shape index: {}]   ;;  %s470_s5 = inlined_call_operand.vmem [shape: f32[2,180], index: 5, kind: output, shape index: {}]  }
   0x1   :  { %267 = vmatprep.subr.bf16.mxu0 %v311_v0  ;;  %v21_v1 = vld [vmem:[%s465_s1] sm:$0xff]  ;;  %v22_v2 = vld [vmem:[%s465_s1 + $0x8] sm:$0xff]  ;;  %v23_v3 = vld [vmem:[%s465_s1 + $0x10] sm:$0xff]  ;;  %264 = vmatprep.mubr.msk.f32.mxu0 %vm312_vm0, %v313_v4  ;;  %vm241_vm2 = vcmask 1041408   ;;  %vm242_vm3 = vcmask 420866  }
   0x2   :  { %v268_v5 = vpack.c.bf16 %v22_v2, %v21_v1  ;;  %v24_v6 = vld [vmem:[%s465_s1 + $0x18] sm:$0xff]  ;;  %v116_v7 = vld [vmem:[%s466_s3 + $0x8] sm:$0xff]  ;;  %223 = vmatprep.mubr.f32.mxu1 %v313_v4  ;;  %v115_v9 = vld [vmem:[%s466_s3] sm:$0xff] }
   0x3   :  { %v118_v8 = vld [vmem:[%s466_s3 + $0x18] sm:$0xff]  ;;  %v117_v10 = vld [vmem:[%s466_s3 + $0x10] sm:$0xff]  ;;  %v271_v11 = vpack.c.bf16 %v24_v6, %v23_v3  ;;  %v120_v14 = vld [vmem:[%s466_s3 + $0x28] sm:$0xff]  ;;  %v149_v6 = vlaneseq }
   0x4   :  { %269 = vmatpush3.bf16.msra.mxu0 %v268_v5  ;;  %v273_v12 = vpack.c.bf16 %v118_v8, %v116_v7  ;;  %v275_v13 = vpack.c.bf16 %v117_v10, %v115_v9  ;;  %v122_v15 = vld [vmem:[%s466_s3 + $0x38] sm:$0xff]  ;;  %v119_v16 = vld [vmem:[%s466_s3 + $0x20] sm:$0xff]  ;;  %v121_v18 = vld [vmem:[%s466_s3 + $0x30] sm:$0xff] }
   0x5   :  { %270 = vmatprep.subr.bf16.mxu0 %v311_v0  ;;  %v277_v17 = vpack.c.bf16 %v122_v15, %v120_v14  ;;  %v279_v19 = vpack.c.bf16 %v121_v18, %v119_v16  ;;  %v20_v20 = vld [vmem:[%s467_s0] sm:$0x3]  ;;  %v124_v21 = vld [vmem:[%s466_s3 + $0x48] sm:$0xff]  ;;  %v126_v22 = vld [vmem:[%s466_s3 + $0x58] sm:$0xff]  ;;  %v150_v7 = vshrl.u32 %v149_v6, 7 }
   0x6   :  { %274 = vmatprep.subr.bf16.mxu1 %v273_v12  ;;  %v281_v23 = vpack.c.bf16 %v126_v22, %v124_v21  ;;  %v123_v24 = vld [vmem:[%s466_s3 + $0x40] sm:$0xff]  ;;  %v125_v25 = vld [vmem:[%s466_s3 + $0x50] sm:$0xff]  ;;  %v128_v27 = vld [vmem:[%s466_s3 + $0x68] sm:$0xff] }
   0x7   :  { %276 = vmatpush1.bf16.msra.mxu1 %v275_v13  ;;  %v283_v26 = vpack.c.bf16 %v125_v25, %v123_v24  ;;  %v130_v28 = vld [vmem:[%s466_s3 + $0x78] sm:$0xff]  ;;  %v127_v30 = vld [vmem:[%s466_s3 + $0x60] sm:$0xff]  ;;  %v129_v31 = vld [vmem:[%s466_s3 + $0x70] sm:$0xff]  ;;  %v151_v8 = vsub.s32 0, %v150_v7  ;;  %v155_v10 = vsub.s32 1, %v150_v7 }
   0x8   :  { %272 = vmatpush3.bf16.msra.mxu0 %v271_v11  ;;  %278 = vmatprep.subr.bf16.mxu1 %v277_v17  ;;  %v285_v29 = vpack.c.bf16 %v130_v28, %v128_v27  ;;  %v287_v32 = vpack.c.bf16 %v129_v31, %v127_v30  ;;  %v132_v33 = vld [vmem:[%s466_s3 + $0x88] sm:$0xff]  ;;  %v134_v34 = vld [vmem:[%s466_s3 + $0x98] sm:$0xff]  ;;  %v131_v36 = vld [vmem:[%s466_s3 + $0x80] sm:$0xff]  ;;  %v314_v11 = vmov 1983009808  }
   0x9   :  { %v289_v35 = vpack.c.bf16 %v134_v34, %v132_v33  ;;  %v133_v37 = vld [vmem:[%s466_s3 + $0x90] sm:$0xff]  ;;  %v136_v39 = vld [vmem:[%s466_s3 + $0xa8] sm:$0xff]  ;;  %v138_v40 = vld [vmem:[%s466_s3 + $0xb8] sm:$0xff]  ;;  %v234_v12 = vunpack.c.l.s4 %v314_v11 }
   0xa   :  { %v291_v38 = vpack.c.bf16 %v133_v37, %v131_v36  ;;  %v135_v41 = vld [vmem:[%s466_s3 + $0xa0] sm:$0xff]  ;;  %v293_v42 = vpack.c.bf16 %v138_v40, %v136_v39  ;;  %v137_v43 = vld [vmem:[%s466_s3 + $0xb0] sm:$0xff]  ;;  %v140_v44 = vld [vmem:[%s466_s3 + $0xc8] sm:$0xff] }
   0xb   :  { %265 = vmatmul.mubr.msk.f32.vlgmr.msra.gmra.mrb[0].mxu0 %vm32_vm1, %v20_v20  ;;  %280 = vmatpush1.bf16.msra.mxu1 %v279_v19  ;;  %v142_v45 = vld [vmem:[%s466_s3 + $0xd8] sm:$0xff]  ;;  %v295_v46 = vpack.c.bf16 %v137_v43, %v135_v41  ;;  %v139_v48 = vld [vmem:[%s466_s3 + $0xc0] sm:$0xff]  ;;  %v141_v49 = vld [vmem:[%s466_s3 + $0xd0] sm:$0xff]  ;;  %v235_v15 = vunpack.c.0.s8 %v234_v12 }
   0xc   :  { %282 = vmatprep.subr.bf16.mxu1 %v281_v23  ;;  %v297_v47 = vpack.c.bf16 %v142_v45, %v140_v44  ;;  %v144_v50 = vld [vmem:[%s466_s3 + $0xe8] sm:$0xff]  ;;  %v146_v51 = vld [vmem:[%s466_s3 + $0xf8] sm:$0xff]  ;;  %v299_v52 = vpack.c.bf16 %v141_v49, %v139_v48  ;;  %v143_v54 = vld [vmem:[%s466_s3 + $0xe0] sm:$0xff] }
   0xd   :  { %v301_v53 = vpack.c.bf16 %v146_v51, %v144_v50  ;;  %v145_v55 = vld [vmem:[%s466_s3 + $0xf0] sm:$0xff]  ;;  %v249_v57 = vld [vmem:[%s468_s2] ss:$0 sm:$0xff]  ;;  %v238_v20 = vsub.s32 %v235_v15, %v150_v7  ;;  %vm243_vm4 = vmor %vm242_vm3, %vm241_vm2 }
   0xe   :  { %v303_v56 = vpack.c.bf16 %v145_v55, %v143_v54  ;;  %v147_v9 = vld [vmem:[%s469_s4] sm:$0x3] }
   0xf   :  { %284 = vmatpush1.bf16.msra.mxu1 %v283_v26  ;;  %v152_v13 = vrot.slane %v147_v9, %v151_v8  ;;  %v156_v14 = vrot.slane %v147_v9, %v155_v10 }
  0x10   :  { %286 = vmatprep.subr.bf16.mxu1 %v285_v29 }
  0x13   :  { %288 = vmatpush1.bf16.msra.mxu1 %v287_v32 }
  0x14   :  { %290 = vmatprep.subr.bf16.mxu1 %v289_v35 }
  0x17   :  { %292 = vmatpush1.bf16.msra.mxu1 %v291_v38 }
  0x18   :  { %294 = vmatprep.subr.bf16.mxu1 %v293_v42 }
  0x1b   :  { %296 = vmatpush1.bf16.msra.mxu1 %v295_v46 }
  0x1c   :  { %298 = vmatprep.subr.bf16.mxu1 %v297_v47 }
  0x1f   :  { %300 = vmatpush1.bf16.msra.mxu1 %v299_v52 }
  0x20   :  { %302 = vmatprep.subr.bf16.mxu1 %v301_v53 }
  0x23   :  { %304 = vmatpush1.bf16.msra.mxu1 %v303_v56 }
  0xde   :  { %v102_v58 = vpop.f32.mrb[0].mxu0 }
  0xdf   :  { %v103_v59 = vadd.f32 %v249_v57, %v102_v58  ;;  %v266_v60 = vpop.f32.mrb[1].mxu0 }
  0xe1   :  { %v106_v61 = vmul.f32 %v103_v59, %v103_v59  ;;  %v108_v63 = vmul.f32 0.7978846, %v103_v59  ;;  %v107_v3 = vmul.f32 0.5, %v103_v59 }
  0xe3   :  { %v109_v62 = vmul.f32 0.044715, %v106_v61 }
  0xe5   :  { %v110_v0 = vadd.f32 1.0, %v109_v62 }
  0xe7   :  { %v111_v1 = vmul.f32 %v110_v0, %v108_v63 }
  0xe9   :  { %309 = vtanh.f32 %v111_v1 }
  0xf3   :  { %v310_v2 = vpop.eup %309 }
  0xf4   :  { %v113_v4 = vadd.f32 1.0, %v310_v2 }
  0xf6   :  { %v114_v5 = vmul.f32 %v113_v4, %v107_v3 }
  0xf8   :  { %224 = vmatmul.mubr.f32.vlgmr.msra.gmra.mrb[0].mxu1 %v114_v5 }
 0x1cb   :  { %v225_v16 = vpop.f32.mrb[0].mxu1 }
 0x1cc   :  { %v226_v17 = vadd.f32 %v225_v16, %v152_v13  ;;  %v227_v18 = vpop.f32.mrb[1].mxu1 }
 0x1cd   :  { %v228_v19 = vadd.f32 %v227_v18, %v156_v14 }
 0x1cf   :  { %v232_v21 = vcombine.low %v226_v17, %v228_v19 }
 0x1d1   :  { %v239_v22 = vrot.slane %v232_v21, %v238_v20 }
 0x1d3   :  { %244 = vst.msk [vmem:[%s470_s5] sm:$0xf] %vm243_vm4, %v239_v22 }

</bundles_post_ra>
